<compile_context>
chip_gen: v6e
topology: v6e:2x2x1
jax: 0.10.0
libtpu: 0.0.40
codegen_flags: <defaults>
</compile_context>

<pallas_src>
from functools import partial

import jax
import jax.numpy as jnp
from jax import lax
from jax.experimental import pallas as pl
from jax.experimental.pallas import tpu as pltpu

# Keep under v7x's 64 MiB physical VMEM with headroom (v5e/v6e have 128 MiB).
_VMEM_LIMIT_BYTES = 48 * 1024 * 1024


def _round_up(v, m):
    return ((v + m - 1) // m) * m


# ---------------- fused label propagation + thresholded update ----------------

def _propagate_update_kernel(steps_ref, adj_ref, lab_ref, out_ref, z_sc):
    # z = norm_adj^(steps) @ train_label ; then
    # mask = (z.max(1) >= 0.5) & ~known ; train_label[mask] = (z[mask] >= 0.5)
    z_sc[...] = lab_ref[...]

    @pl.loop(0, steps_ref[0])                      # dynamic power count (1 + bad_counter)
    def _(p):
        # adjacency stays VMEM-resident across all power steps (one HBM stream/iter)
        z_sc[...] = jnp.dot(adj_ref[...], z_sc[...].astype(jnp.bfloat16),
                            preferred_element_type=jnp.float32)

    lab = lab_ref[...]                             # pre-update labels
    z = z_sc[...]
    known = jnp.max(lab, axis=1, keepdims=True) != 0.0
    upd = jnp.logical_and(jnp.max(z, axis=1, keepdims=True) >= 0.5,
                          jnp.logical_not(known))
    out_ref[...] = jnp.where(upd, (z >= 0.5).astype(jnp.float32), lab)


def propagate_and_update(norm_adj_bf16, label_padded, num_steps):
    # TODO(synk): for graphs whose (N, N) adjacency exceeds VMEM this kernel needs
    # a tiled/streaming variant; here adj is kept fully VMEM-resident.
    n, cp = label_padded.shape
    steps = jnp.asarray(num_steps, jnp.int32).reshape(1)
    return pl.pallas_call(
        _propagate_update_kernel,
        out_shape=jax.ShapeDtypeStruct((n, cp), jnp.float32),
        in_specs=[pl.BlockSpec(memory_space=pltpu.MemorySpace.SMEM),   # power count
                  pl.BlockSpec(memory_space=pltpu.MemorySpace.VMEM),   # adjacency (bf16)
                  pl.BlockSpec(memory_space=pltpu.MemorySpace.VMEM)],  # labels (f32)
        out_specs=pl.BlockSpec(memory_space=pltpu.MemorySpace.VMEM),
        scratch_shapes=[pltpu.VMEM((n, cp), jnp.float32)],
        input_output_aliases={2: 0},   # updated labels overwrite the old HBM buffer
        compiler_params=pltpu.CompilerParams(vmem_limit_bytes=_VMEM_LIMIT_BYTES),
    )(steps, norm_adj_bf16, label_padded)


# -------------------- cosine similarity: row max / argmax ---------------------

def _cosine_kernel(thr_ref, xq_ref, xk_ref, smax_ref, sarg_ref):
    # cosine_sim(x).squeeze().fill_diagonal_(0) for one row stripe, optional clip
    # at threshold, then per-row max and argmax (smallest index on ties).
    i = pl.program_id(0)
    tq = xq_ref.shape[0]
    n = xk_ref.shape[0]
    sim = lax.dot_general(xq_ref[...], xk_ref[...], (((1,), (1,)), ((), ())),
                          preferred_element_type=jnp.float32)          # (TQ, N)
    row = lax.broadcasted_iota(jnp.int32, (tq, n), 0) + i * tq
    col = lax.broadcasted_iota(jnp.int32, (tq, n), 1)
    sim = jnp.where(row == col, 0.0, sim)          # fill_diagonal_(0)
    thr = thr_ref[0]
    sim = jnp.where(sim < thr, sim, thr - 0.1)     # sim.where(sim < thr, thr - 0.1)
    smax = jnp.max(sim, axis=-1)                   # (TQ,)
    smax_ref[...] = smax[None, :]
    # TODO(synk): PyTorch argmax tie-breaking is not guaranteed; we use smallest index.
    sarg_ref[...] = jnp.min(jnp.where(sim == smax[:, None], col, n),
                            axis=-1)[None, :]


def _row_tile(n):
    for t in (512, 256, 128):
        if n % t == 0:
            return t
    return n


def cosine_sim_maxarg(xn_padded, clip_thr):
    n, fp = xn_padded.shape
    tq = _row_tile(n)
    g = n // tq
    thr = jnp.asarray(clip_thr, jnp.float32).reshape(1)
    smax, sarg = pl.pallas_call(
        _cosine_kernel,
        grid=(g,),
        out_shape=(jax.ShapeDtypeStruct((g, tq), jnp.float32),
                   jax.ShapeDtypeStruct((g, tq), jnp.int32)),
        in_specs=[pl.BlockSpec(memory_space=pltpu.MemorySpace.SMEM),   # clip threshold
                  pl.BlockSpec((tq, fp), lambda i: (i, 0)),            # row stripe
                  pl.BlockSpec((n, fp), lambda i: (0, 0))],            # all rows (resident)
        out_specs=(pl.BlockSpec((1, tq), lambda i: (i, 0)),            # lane-dense slabs
                   pl.BlockSpec((1, tq), lambda i: (i, 0))),
        compiler_params=pltpu.CompilerParams(
            dimension_semantics=("parallel",),     # shards row stripes across v7x's 2 TCs
            vmem_limit_bytes=_VMEM_LIMIT_BYTES),
    )(thr, xn_padded, xn_padded)
    return smax.reshape(n), sarg.reshape(n)


# --------------------------------- JAX glue -----------------------------------

def get_normalized_adj(edge_index, edge_weight, num_nodes):
    # TODO(synk): exact `get_normalized_adj` helper is external to the module;
    # standard GCN symmetric normalization with self-loops: D^-1/2 (A+I) D^-1/2.
    del edge_weight
    a = jnp.zeros((num_nodes, num_nodes), jnp.float32)
    a = a.at[edge_index[0], edge_index[1]].set(1.0)
    a = a.at[edge_index[1], edge_index[0]].set(1.0)
    a = a + jnp.eye(num_nodes, dtype=jnp.float32)
    deg = jnp.sum(a, axis=1)
    dinv = 1.0 / jnp.sqrt(jnp.maximum(deg, 1e-12))
    return a * dinv[:, None] * dinv[None, :]


@partial(jax.jit, static_argnames=("max_iters",))
def _run_label_prop(norm_adj_bf16, xn_padded, label0_padded, nodes0, max_iters):
    n = norm_adj_bf16.shape[0]

    def cond_fn(state):
        it, label, bad, thr, pre_fea, nodes_prev = state
        unlabeled = n - jnp.sum(jnp.max(label, axis=1) != 0.0)
        return jnp.logical_and(it < max_iters, unlabeled != 0)

    def body_fn(state):
        it, label, bad, thr, pre_fea, nodes_prev = state
        known_top = jnp.max(label, axis=1) != 0.0         # known mask BEFORE updates
        nodes = n - jnp.sum(known_top)
        same = nodes == nodes_prev
        bad = jnp.where(same, bad + 1, 0)
        thr = jnp.where(same, thr, jnp.float32(0.5))

        # z = norm_adj.matrix_power(1 + bad).mm(train_label) + label update, fused.
        label = propagate_and_update(norm_adj_bf16, label, 1 + bad)

        def fallback(ops):
            lbl, t, pf = ops
            fea_same = pf == nodes.astype(jnp.float32)    # NaN initially -> False
            clip_thr = jnp.where(fea_same, t, jnp.float32(2.0))  # 2.0 = no-op clip (cos <= 1)
            new_thr = jnp.where(fea_same, t - jnp.float32(0.1), jnp.float32(0.5))
            smax, sarg = cosine_sim_maxarg(xn_padded, clip_thr)
            fea_labels = jnp.take(lbl, sarg, axis=0)
            upd = jnp.logical_and(jnp.logical_not(known_top), smax >= new_thr)
            lbl = jnp.where(upd[:, None], fea_labels, lbl)
            return lbl, new_thr, nodes.astype(jnp.float32)

        label, thr, pre_fea = lax.cond(bad > 1, fallback, lambda ops: ops,
                                       (label, thr, pre_fea))
        bad = jnp.where(bad > 1, 0, bad)
        return (it + 1, label, bad, thr, pre_fea, nodes)

    state0 = (jnp.asarray(0, jnp.int32), label0_padded, jnp.asarray(0, jnp.int32),
              jnp.asarray(0.5, jnp.float32), jnp.asarray(jnp.nan, jnp.float32),
              nodes0)
    return lax.while_loop(cond_fn, body_fn, state0)[1]


def net_forward(x, edge_index, train_mask, y, num_classes=None, max_iters=1000):
    n, f = x.shape
    c = int(num_classes) if num_classes is not None else int(jnp.max(y)) + 1
    cp = max(128, _round_up(c, 128))      # class dim padded to one lane width
    fp = max(128, _round_up(f, 128))      # feature dim padded to lane width

    label = jax.nn.one_hot(y, c, dtype=jnp.float32)
    train_label = jnp.where(train_mask[:, None], label, 0.0)
    label0 = jnp.zeros((n, cp), jnp.float32).at[:, :c].set(train_label)

    # bf16 adjacency halves HBM/VMEM traffic; the matmuls accumulate in f32.
    norm_adj = get_normalized_adj(edge_index, None, n).astype(jnp.bfloat16)

    # Hoisted cosine-similarity normalization: x never changes inside the loop.
    xf = x.astype(jnp.float32)
    xn = xf / jnp.maximum(jnp.sqrt(jnp.sum(xf * xf, axis=-1, keepdims=True)), 1e-8)
    xn_padded = jnp.zeros((n, fp), jnp.bfloat16).at[:, :f].set(xn.astype(jnp.bfloat16))

    nodes0 = (jnp.asarray(n, jnp.int32)
              - jnp.count_nonzero(train_mask).astype(jnp.int32))

    final = _run_label_prop(norm_adj, xn_padded, label0, nodes0, max_iters=max_iters)
    return final[:, :c], x


# ----------------------------------- main --------------------------------------

if __name__ == "__main__":
    key = jax.random.PRNGKey(0)
    kx, ky, ke, km = jax.random.split(key, 4)

    N, F, E, NUM_CLASSES = 64, 32, 256, 8
    x = jax.random.normal(kx, (N, F), dtype=jnp.float32)
    y = jax.random.randint(ky, (N,), 0, NUM_CLASSES, dtype=jnp.int32)
    y = y.at[:NUM_CLASSES].set(jnp.arange(NUM_CLASSES, dtype=jnp.int32))  # all classes present
    src = jax.random.randint(ke, (E,), 0, N, dtype=jnp.int32)
    dst = jax.random.randint(jax.random.fold_in(ke, 1), (E,), 0, N, dtype=jnp.int32)
    edge_index = jnp.stack([src, dst])
    train_mask = jax.random.uniform(km, (N,)) < 0.25
    train_mask = train_mask.at[:NUM_CLASSES].set(True)   # deterministic labeled seeds

    # nn.Parameter `eps` from __init__ — deterministically initialized; unused in forward.
    eps = jnp.zeros((1,), jnp.float32)

    train_label, x_out = net_forward(x, edge_index, train_mask, y,
                                     num_classes=NUM_CLASSES)
    jax.block_until_ready((train_label, x_out))
    assert train_label.shape == (N, NUM_CLASSES) and x_out.shape == (N, F)
    assert bool(jnp.all(jnp.isfinite(train_label)))
    print("KERNEL_OK")
</pallas_src>

<mosaic_0001>
module attributes {stable_mosaic.version = 11 : i64} {
  func.func @_cosine_kernel(%arg0: i32, %arg1: memref<1xf32, #tpu.memory_space<smem>>, %arg2: memref<64x128xbf16, #tpu.memory_space<vmem>>, %arg3: memref<64x128xbf16, #tpu.memory_space<vmem>>, %arg4: memref<1x64xf32, #tpu.memory_space<vmem>>, %arg5: memref<1x64xi32, #tpu.memory_space<vmem>>) attributes {dimension_semantics = [#tpu.dimension_semantics<parallel>], iteration_bounds = array<i64: 1>, scalar_prefetch = 0 : i64, scratch_operands = 0 : i64, tpu.core_type = #tpu.core_type<tc>, window_params = [{transform_indices = @transform_0, window_bounds = array<i64: 1>}, {transform_indices = @transform_1, window_bounds = array<i64: 64, 128>}, {pipeline_mode = #tpu.pipeline_mode<synchronous>, transform_indices = @transform_2, window_bounds = array<i64: 64, 128>}, {transform_indices = @transform_3, window_bounds = array<i64: 1, 64>}, {transform_indices = @transform_4, window_bounds = array<i64: 1, 64>}]} {
    %c0 = arith.constant 0 : index
    %c0_0 = arith.constant 0 : index
    %0 = vector.load %arg2[%c0, %c0_0] : memref<64x128xbf16, #tpu.memory_space<vmem>>, vector<64x128xbf16>
    %c0_1 = arith.constant 0 : index
    %c0_2 = arith.constant 0 : index
    %1 = vector.load %arg3[%c0_1, %c0_2] : memref<64x128xbf16, #tpu.memory_space<vmem>>, vector<64x128xbf16>
    %cst = arith.constant dense<0.000000e+00> : vector<64x64xf32>
    %2 = tpu.matmul %0, %1, %cst {dimension_numbers = #tpu.dot_dimension_numbers<[1], [1], [0], [0], [0, 0, 1, 0], [], []>} : vector<64x128xbf16>, vector<64x128xbf16>, vector<64x64xf32> -> vector<64x64xf32>
    %3 = tpu.iota {dimensions = array<i32: 0>} : vector<64x64xi32>
    %c64_i32 = arith.constant 64 : i32
    %4 = arith.muli %arg0, %c64_i32 : i32
    %5 = vector.broadcast %4 : i32 to vector<64x64xi32>
    %6 = arith.addi %3, %5 : vector<64x64xi32>
    %7 = tpu.iota {dimensions = array<i32: 1>} : vector<64x64xi32>
    %8 = arith.cmpi eq, %6, %7 : vector<64x64xi32>
    %cst_3 = arith.constant 0.000000e+00 : f32
    %9 = vector.broadcast %cst_3 : f32 to vector<64x64xf32>
    %10 = arith.select %8, %9, %2 : vector<64x64xi1>, vector<64x64xf32>
    %c0_4 = arith.constant 0 : index
    %11 = memref.load %arg1[%c0_4] : memref<1xf32, #tpu.memory_space<smem>>
    %12 = vector.broadcast %11 : f32 to vector<64x64xf32>
    %13 = arith.cmpf olt, %10, %12 : vector<64x64xf32>
    %cst_5 = arith.constant 1.000000e-01 : f32
    %14 = arith.subf %11, %cst_5 : f32
    %15 = vector.broadcast %14 : f32 to vector<64x64xf32>
    %16 = arith.select %13, %10, %15 : vector<64x64xi1>, vector<64x64xf32>
    %cst_6 = arith.constant dense<0xFF800000> : vector<64xf32>
    %17 = vector.multi_reduction <maximumf>, %16, %cst_6 [1] : vector<64x64xf32> to vector<64xf32>
    %18 = vector.shape_cast %17 : vector<64xf32> to vector<1x64xf32>
    %c0_7 = arith.constant 0 : index
    %c0_8 = arith.constant 0 : index
    %19 = vector.load %arg4[%c0_7, %c0_8] : memref<1x64xf32, #tpu.memory_space<vmem>>, vector<1x64xf32>
    tpu.vector_store %arg4[%c0_7, %c0_8], %18 {strides = array<i32>} : memref<1x64xf32, #tpu.memory_space<vmem>>, vector<1x64xf32>,
    %20 = vector.shape_cast %17 : vector<64xf32> to vector<64x1xf32>
    %21 = vector.broadcast %20 : vector<64x1xf32> to vector<64x64xf32>
    %22 = arith.cmpf oeq, %16, %21 : vector<64x64xf32>
    %c64_i32_9 = arith.constant 64 : i32
    %23 = vector.broadcast %c64_i32_9 : i32 to vector<64x64xi32>
    %24 = arith.select %22, %7, %23 : vector<64x64xi1>, vector<64x64xi32>
    %cst_10 = arith.constant dense<2147483647> : vector<64xi32>
    %25 = vector.multi_reduction <minsi>, %24, %cst_10 [1] : vector<64x64xi32> to vector<64xi32>
    %26 = vector.shape_cast %25 : vector<64xi32> to vector<1x64xi32>
    %c0_11 = arith.constant 0 : index
    %c0_12 = arith.constant 0 : index
    %27 = vector.load %arg5[%c0_11, %c0_12] : memref<1x64xi32, #tpu.memory_space<vmem>>, vector<1x64xi32>
    tpu.vector_store %arg5[%c0_11, %c0_12], %26 {strides = array<i32>} : memref<1x64xi32, #tpu.memory_space<vmem>>, vector<1x64xi32>,
    return
  }
  func.func @transform_0(%arg0: i32) -> i32 {
    %c0_i32 = arith.constant 0 : i32
    %c0_i32_0 = arith.constant 0 : i32
    return %c0_i32 : i32
  }
  func.func @transform_1(%arg0: i32) -> (i32, i32) {
    %c0_i32 = arith.constant 0 : i32
    %c0_i32_0 = arith.constant 0 : i32
    return %arg0, %c0_i32 : i32, i32
  }
  func.func @transform_2(%arg0: i32) -> (i32, i32) {
    %c0_i32 = arith.constant 0 : i32
    %c0_i32_0 = arith.constant 0 : i32
    %c0_i32_1 = arith.constant 0 : i32
    return %c0_i32, %c0_i32_0 : i32, i32
  }
  func.func @transform_3(%arg0: i32) -> (i32, i32) {
    %c0_i32 = arith.constant 0 : i32
    %c0_i32_0 = arith.constant 0 : i32
    return %arg0, %c0_i32 : i32, i32
  }
  func.func @transform_4(%arg0: i32) -> (i32, i32) {
    %c0_i32 = arith.constant 0 : i32
    %c0_i32_0 = arith.constant 0 : i32
    return %arg0, %c0_i32 : i32, i32
  }
}

module attributes {stable_mosaic.version = 11 : i64} {
  func.func @_propagate_update_kernel(%arg0: memref<1xi32, #tpu.memory_space<smem>>, %arg1: memref<64x64xbf16, #tpu.memory_space<vmem>>, %arg2: memref<64x128xf32, #tpu.memory_space<vmem>>, %arg3: memref<64x128xf32, #tpu.memory_space<vmem>>, %arg4: memref<64x128xf32, #tpu.memory_space<vmem>>) attributes {dimension_semantics = [], scalar_prefetch = 0 : i64, scratch_operands = 1 : i64, tpu.core_type = #tpu.core_type<tc>} {
    %c0 = arith.constant 0 : index
    %c0_0 = arith.constant 0 : index
    %0 = vector.load %arg2[%c0, %c0_0] : memref<64x128xf32, #tpu.memory_space<vmem>>, vector<64x128xf32>
    %c0_1 = arith.constant 0 : index
    %c0_2 = arith.constant 0 : index
    %1 = vector.load %arg4[%c0_1, %c0_2] : memref<64x128xf32, #tpu.memory_space<vmem>>, vector<64x128xf32>
    tpu.vector_store %arg4[%c0_1, %c0_2], %0 {strides = array<i32>} : memref<64x128xf32, #tpu.memory_space<vmem>>, vector<64x128xf32>,
    %c0_3 = arith.constant 0 : index
    %2 = memref.load %arg0[%c0_3] : memref<1xi32, #tpu.memory_space<smem>>
    %c0_i32 = arith.constant 0 : i32
    %3 = arith.subi %2, %c0_i32 : i32
    %c1_i32 = arith.constant 1 : i32
    %c1_i32_4 = arith.constant 1 : i32
    %4 = arith.subi %c1_i32, %c1_i32_4 : i32
    %5 = arith.addi %3, %4 : i32
    %c1_i32_5 = arith.constant 1 : i32
    %6 = arith.divsi %5, %c1_i32_5 : i32
    %c1_i32_6 = arith.constant 1 : i32
    %c0_i32_7 = arith.constant 0 : i32
    %c0_i32_8 = arith.constant 0 : i32
    %7 = arith.subi %6, %c0_i32_8 : i32
    %8 = arith.addi %c0_i32_8, %7 : i32
    %c1_i32_9 = arith.constant 1 : i32
    scf.for %arg5 = %c0_i32_8 to %8 step %c1_i32_9  : i32 {
      %29 = arith.muli %arg5, %c1_i32_6 : i32
      %30 = arith.addi %c0_i32_7, %29 : i32
      %c0_21 = arith.constant 0 : index
      %c0_22 = arith.constant 0 : index
      %31 = vector.load %arg1[%c0_21, %c0_22] : memref<64x64xbf16, #tpu.memory_space<vmem>>, vector<64x64xbf16>
      %c0_23 = arith.constant 0 : index
      %c0_24 = arith.constant 0 : index
      %32 = vector.load %arg4[%c0_23, %c0_24] : memref<64x128xf32, #tpu.memory_space<vmem>>, vector<64x128xf32>
      %33 = arith.truncf %32 : vector<64x128xf32> to vector<64x128xbf16>
      %cst_25 = arith.constant dense<0.000000e+00> : vector<64x128xf32>
      %34 = tpu.matmul %31, %33, %cst_25 {dimension_numbers = #tpu.dot_dimension_numbers<[1], [0], [0], [1], [0, 0, 1, 1], [], []>} : vector<64x64xbf16>, vector<64x128xbf16>, vector<64x128xf32> -> vector<64x128xf32>
      %c0_26 = arith.constant 0 : index
      %c0_27 = arith.constant 0 : index
      %35 = vector.load %arg4[%c0_26, %c0_27] : memref<64x128xf32, #tpu.memory_space<vmem>>, vector<64x128xf32>
      tpu.vector_store %arg4[%c0_26, %c0_27], %34 {strides = array<i32>} : memref<64x128xf32, #tpu.memory_space<vmem>>, vector<64x128xf32>,
    }
    %c0_10 = arith.constant 0 : index
    %c0_11 = arith.constant 0 : index
    %9 = vector.load %arg2[%c0_10, %c0_11] : memref<64x128xf32, #tpu.memory_space<vmem>>, vector<64x128xf32>
    %c0_12 = arith.constant 0 : index
    %c0_13 = arith.constant 0 : index
    %10 = vector.load %arg4[%c0_12, %c0_13] : memref<64x128xf32, #tpu.memory_space<vmem>>, vector<64x128xf32>
    %cst = arith.constant dense<0xFF800000> : vector<64xf32>
    %11 = vector.multi_reduction <maximumf>, %9, %cst [1] : vector<64x128xf32> to vector<64xf32>
    %12 = vector.shape_cast %11 : vector<64xf32> to vector<64x1xf32>
    %cst_14 = arith.constant 0.000000e+00 : f32
    %13 = vector.broadcast %cst_14 : f32 to vector<64x1xf32>
    %14 = arith.cmpf one, %12, %13 : vector<64x1xf32>
    %cst_15 = arith.constant dense<0xFF800000> : vector<64xf32>
    %15 = vector.multi_reduction <maximumf>, %10, %cst_15 [1] : vector<64x128xf32> to vector<64xf32>
    %16 = vector.shape_cast %15 : vector<64xf32> to vector<64x1xf32>
    %cst_16 = arith.constant 5.000000e-01 : f32
    %17 = vector.broadcast %cst_16 : f32 to vector<64x1xf32>
    %18 = arith.cmpf oge, %16, %17 : vector<64x1xf32>
    %cst_17 = arith.constant dense<true> : vector<64x1xi1>
    %19 = arith.xori %14, %cst_17 : vector<64x1xi1>
    %20 = arith.andi %18, %19 : vector<64x1xi1>
    %cst_18 = arith.constant 5.000000e-01 : f32
    %21 = vector.broadcast %cst_18 : f32 to vector<64x128xf32>
    %22 = arith.cmpf oge, %10, %21 : vector<64x128xf32>
    %23 = arith.extui %22 : vector<64x128xi1> to vector<64x128xi32>
    %24 = arith.sitofp %23 : vector<64x128xi32> to vector<64x128xf32>
    %25 = vector.shape_cast %20 : vector<64x1xi1> to vector<64x1xi1>
    %26 = vector.broadcast %25 : vector<64x1xi1> to vector<64x128xi1>
    %27 = arith.select %26, %24, %9 : vector<64x128xi1>, vector<64x128xf32>
    %c0_19 = arith.constant 0 : index
    %c0_20 = arith.constant 0 : index
    %28 = vector.load %arg3[%c0_19, %c0_20] : memref<64x128xf32, #tpu.memory_space<vmem>>, vector<64x128xf32>
    tpu.vector_store %arg3[%c0_19, %c0_20], %27 {strides = array<i32>} : memref<64x128xf32, #tpu.memory_space<vmem>>, vector<64x128xf32>,
    return
  }
}

</mosaic_0001>

<bundles_post_ra>
// kernel: body.3
= control target key start
LH: loop header
LB: loop body
LE: loop exit
PB: predicated region body
PF: predicated region fallthrough
CT: control target
= control target key end

     0   :  { %9 = vsyncpa [#allocation5], 0  ;;  %s581_s0 = inlined_call_operand.<no memory space> [shape: s32[1], index: 0, kind: input, shape index: {}]   ;;  %s582_s1 = inlined_call_operand.vmem [shape: bf16[64,64], index: 1, kind: input, shape index: {}]   ;;  %s583_s2 = inlined_call_operand.hbm [shape: f32[64,128], index: 2, kind: input, shape index: {}, may-alias: {2,3}]   ;;  %s584_s3 = inlined_call_operand.hbm [shape: f32[64,128], index: 3, kind: output, shape index: {}, may-alias: {2,3}]  }
   0x1   :  { %10 = vsyncpa [#allocation6], 0  ;;  %s457_s12 = smov [#allocation4]  }
   0x2   :  { %s20_s13 = sshll.u32 %s457_s12, 4  ;;  %s21_s13 = int_to_ptr.vmem [resolvable:$true] %s20_s13 }
   0x3   :  { %s413_s14 = scalar_lea.vmem %s21_s13, 1024  ;;  %p418_p1 = scmp.lt.s32.totalorder %s21_s13, %s21_s13 }
   0x4   :  { %p414_p0 = scmp.ne.s32.totalorder %s21_s13, %s413_s14  ;;  %p419_p2 = scmp.lt.s32.totalorder %s413_s14, %s413_s14 }
   0x6   :  { %p420_p3 = por %p419_p2, %p418_p1 }
   0x8   :  { %p421_p4 = pnand %p420_p3, %p414_p0 }
   0xa   :  { %424 = shalt.err (!%p421_p4)
}
   0xb   :  { %s458_s15 = smov 128   ;;  %s459_s16 = smov 8  }
   0xc   :  { %26 = dma.hbm_to_vmem [thread:$0]  %s583_s2, 1024, %s21_s13, [#allocation5], %s458_s15, %s458_s15, %s459_s16  }
   0xd   :  { %449 = dma.done.wait [#allocation5], 1024  }
   0xe   :  { %450 = vsyncadd [#allocation5], 4294966272  ;;  %v31_v0 = vld [vmem:[#allocation4] sm:$0xff]  ;;  %v32_v1 = vld [vmem:[#allocation4 + $0x8] sm:$0xff]  ;;  %p338_p5 = scmp.le.s32.totalorder %s581_s0, 0 }
   0xf   :  { %v33_v2 = vld [vmem:[#allocation4 + $0x10] sm:$0xff]  ;;  %39 = vst [vmem:[#allocation2 + $0x30] sm:$0xff] %v31_v0  ;;  %40 = vst [vmem:[#allocation2] sm:$0xff] %v32_v1  ;;  %v34_v3 = vld [vmem:[#allocation4 + $0x18] sm:$0xff]  ;;  %s492_s20 = smov (!%p338_p5), 0  }
  0x10   :  { %41 = vst [vmem:[#allocation2 + $0x18] sm:$0xff] %v33_v2  ;;  %v35_v4 = vld [vmem:[#allocation4 + $0x20] sm:$0xff]  ;;  %v36_v5 = vld [vmem:[#allocation4 + $0x28] sm:$0xff]  ;;  %42 = vst [vmem:[#allocation2 + $0x10] sm:$0xff] %v34_v3  ;;  %335 = sbr.rel (%p338_p5) target bundleno = 248 (0xf8), region = 37 }
  0x11   :  { %43 = vst [vmem:[#allocation2 + $0x8] sm:$0xff] %v35_v4  ;;  %44 = vst [vmem:[#allocation2 + $0x20] sm:$0xff] %v36_v5  ;;  %v37_v6 = vld [vmem:[#allocation4 + $0x30] sm:$0xff]  ;;  %v38_v7 = vld [vmem:[#allocation4 + $0x38] sm:$0xff] }
  0x12   :  { %45 = vst [vmem:[#allocation2 + $0x28] sm:$0xff] %v37_v6  ;;  %46 = vst [vmem:[#allocation2 + $0x38] sm:$0xff] %v38_v7 }
  0x15 LB: > { %v401_v16 = vld [vmem:[%s582_s1] sm:$0xff]   ;;  %vm94_vm0 = vcmask 523264   ;;  %v402_v17 = vld [vmem:[%s582_s1 + $0x10] sm:$0xff]   ;;  %v403_v22 = vld [vmem:[%s582_s1 + $0x8] sm:$0xff]   ;;  %s51_s20 = sadd.s32 1, %s455_s20   ;;  %s455_s20 = sphi %s492_s20, %s51_s20  }
  0x16   : > { %v62_v19 = vld [vmem:[#allocation2 + $0x30] sm:$0xff]  ;;  %v63_v20 = vld [vmem:[#allocation2] sm:$0xff]  ;;  %371 = vmatprep.mubr.msk.bf16.mxu0 %vm94_vm0, %v401_v16  ;;  %375 = vmatprep.mubr.msk.bf16.mxu1 %vm94_vm0, %v402_v17  ;;  %v404_v23 = vld [vmem:[%s582_s1 + $0x18] sm:$0xff]   ;;  %p50_p6 = scmp.ge.s32.totalorder %s51_s20, %s581_s0 }
  0x17   : > { %v64_v14 = vld [vmem:[#allocation2 + $0x18] sm:$0xff]  ;;  %v65_v15 = vld [vmem:[#allocation2 + $0x10] sm:$0xff]  ;;  %v70_v21 = vpack.c.bf16 %v63_v20, %v62_v19 }
  0x18   : > { %v66_v10 = vld [vmem:[#allocation2 + $0x8] sm:$0xff]  ;;  %v67_v12 = vld [vmem:[#allocation2 + $0x20] sm:$0xff]  ;;  %v71_v18 = vpack.c.bf16 %v65_v15, %v64_v14 }
  0x19   : > { %v68_v8 = vld [vmem:[#allocation2 + $0x28] sm:$0xff]  ;;  %v69_v9 = vld [vmem:[#allocation2 + $0x38] sm:$0xff]  ;;  %v72_v13 = vpack.c.bf16 %v67_v12, %v66_v10 }
  0x1a   : > { %v73_v11 = vpack.c.bf16 %v69_v9, %v68_v8 }
  0x1c   : > { %363 = vmatprep.subr.bf16.mxu0 %v73_v11  ;;  %379 = vmatprep.subr.bf16.mxu1 %v73_v11 }
  0x1d   : > { %364 = vmatpush3.bf16.msra.mxu0 %v73_v11  ;;  %383 = vmatpush3.bf16.msra.mxu1 %v73_v11 }
  0x1e   : > { %365 = vmatprep.subr.bf16.mxu0 %v72_v13  ;;  %380 = vmatprep.subr.bf16.mxu1 %v72_v13 }
  0x21   : > { %366 = vmatpush3.bf16.msra.mxu0 %v72_v13  ;;  %384 = vmatpush3.bf16.msra.mxu1 %v72_v13 }
  0x22   : > { %367 = vmatprep.subr.bf16.mxu0 %v71_v18  ;;  %381 = vmatprep.subr.bf16.mxu1 %v71_v18 }
  0x25   : > { %368 = vmatpush3.bf16.msra.mxu0 %v71_v18  ;;  %385 = vmatpush3.bf16.msra.mxu1 %v71_v18 }
  0x26   : > { %369 = vmatprep.subr.bf16.mxu0 %v70_v21  ;;  %382 = vmatprep.subr.bf16.mxu1 %v70_v21 }
  0x29   : > { %370 = vmatpush3.bf16.msra.mxu0 %v70_v21  ;;  %386 = vmatpush3.bf16.msra.mxu1 %v70_v21 }
  0x2c   : > { %372 = vmatmul.mubr.msk.bf16.vlgmr.msra.gmra.mxu0 %vm94_vm0, %v403_v22  ;;  %376 = vmatmul.mubr.msk.bf16.vlgmr.msra.gmra.mxu1 %vm94_vm0, %v404_v23 }
  0xec   : > { %v373_v24 = vpop.f32.mrf.mxu0  ;;  %v377_v25 = vpop.f32.mrf.mxu1 }
  0xed   : > { %174 = vst [vmem:[#allocation2 + $0x18] sm:$0xff] %v373_v24  ;;  %178 = vst [vmem:[#allocation2 + $0x28] sm:$0xff] %v377_v25 }
  0xee   : > { %v141_v26 = vpop.f32.mrf.mxu0  ;;  %v157_v27 = vpop.f32.mrf.mxu1 }
  0xef   : > { %172 = vst [vmem:[#allocation2 + $0x30] sm:$0xff] %v141_v26  ;;  %176 = vst [vmem:[#allocation2 + $0x8] sm:$0xff] %v157_v27 }
  0xf0   : > { %v374_v28 = vpop.f32.mrf.mxu0  ;;  %v378_v29 = vpop.f32.mrf.mxu1 }
  0xf1   : > { %175 = vst [vmem:[#allocation2 + $0x10] sm:$0xff] %v374_v28  ;;  %179 = vst [vmem:[#allocation2 + $0x38] sm:$0xff] %v378_v29 }
  0xf2   : > { %v144_v30 = vpop.f32.mrf.mxu0  ;;  %v160_v31 = vpop.f32.mrf.mxu1 }
  0xf3   : > { %173 = vst [vmem:[#allocation2] sm:$0xff] %v144_v30  ;;  %177 = vst [vmem:[#allocation2 + $0x20] sm:$0xff] %v160_v31  ;;  %53 = sbr.rel (!%p50_p6) target bundleno = 21 (0x15), region = 43 }
  0xf8 PF:  { %v519_v32 = vld [vmem:[#allocation4 + $0x10] sm:$0xff]  ;;  %v521_v33 = vld [vmem:[#allocation4] sm:$0xff]  ;;  %v525_v34 = vld [vmem:[#allocation4 + $0x18] sm:$0xff]  ;;  %v460_v56 = vmov 0.0   ;;  %vm461_vm7 = vmmov 1   ;;  %s462_s0 = smov [#allocation7]  }
  0xf9   :  { %200 = vmax.xlane.f32.xlu1 %v519_v32  ;;  %196 = vmax.xlane.f32.xlu0 %v521_v33  ;;  %v181_v35 = vld [vmem:[#allocation4 + $0x8] sm:$0xff]  ;;  %v530_v37 = vld [vmem:[#allocation4 + $0x20] sm:$0xff]  ;;  %v534_v38 = vld [vmem:[#allocation4 + $0x38] sm:$0xff]  ;;  %s321_s1 = sshll.u32 %s462_s0, 4  ;;  %s322_s1 = int_to_ptr.vmem [resolvable:$true] %s321_s1 }
  0xfa   :  { %v528_v36 = vld [vmem:[#allocation4 + $0x28] sm:$0xff]  ;;  %v536_v39 = vld [vmem:[#allocation4 + $0x30] sm:$0xff]  ;;  %v189_v40 = vld [vmem:[#allocation2] sm:$0xff]  ;;  %s425_s4 = scalar_lea.vmem %s322_s1, 1024  ;;  %p430_p8 = scmp.lt.s32.totalorder %s322_s1, %s322_s1 }
  0xfb   :  { %v188_v41 = vld [vmem:[#allocation2 + $0x30] sm:$0xff]  ;;  %v190_v43 = vld [vmem:[#allocation2 + $0x18] sm:$0xff]  ;;  %v193_v44 = vld [vmem:[#allocation2 + $0x20] sm:$0xff]  ;;  %vm261_vm1 = vcmp.ge.f32.partialorder %v189_v40, 0.5  ;;  %p426_p7 = scmp.ne.s32.totalorder %s322_s1, %s425_s4  ;;  %p431_p9 = scmp.lt.s32.totalorder %s425_s4, %s425_s4 }
  0xfc   :  { %v191_v42 = vld [vmem:[#allocation2 + $0x10] sm:$0xff]  ;;  %v192_v45 = vld [vmem:[#allocation2 + $0x8] sm:$0xff]  ;;  %v540_v46 = vld [vmem:[#allocation2 + $0x38] sm:$0xff]  ;;  %vm260_vm3 = vcmp.ge.f32.partialorder %v188_v41, 0.5  ;;  %v348_v57 = vsel %vm261_vm1, 1.0, %v460_v56  ;;  %vm262_vm6 = vcmp.ge.f32.partialorder %v190_v43, 0.5 }
  0xfd   :  { %202 = vmax.xlane.f32.xlu1 %v525_v34  ;;  %198 = vmax.xlane.f32.xlu0 %v181_v35  ;;  %v542_v47 = vld [vmem:[#allocation2 + $0x28] sm:$0xff]  ;;  %vm263_vm5 = vcmp.ge.f32.partialorder %v191_v42, 0.5  ;;  %v347_v60 = vsel %vm260_vm3, 1.0, %v460_v56  ;;  %v349_v63 = vsel %vm262_vm6, 1.0, %v460_v56  ;;  %vm265_vm1 = vcmp.ge.f32.partialorder %v193_v44, 0.5  ;;  %p432_p10 = por %p431_p9, %p430_p8 }
  0xfe   :  { %v350_v62 = vsel %vm263_vm5, 1.0, %v460_v56  ;;  %v352_v5 = vsel %vm265_vm1, 1.0, %v460_v56 }
  0xff   :  { %p433_p11 = pnand %p432_p10, %p426_p7 }
 0x101   :  { %206 = vmax.xlane.f32.xlu1 %v528_v36  ;;  %204 = vmax.xlane.f32.xlu0 %v530_v37 }
 0x105   :  { %210 = vmax.xlane.f32.xlu1 %v534_v38  ;;  %208 = vmax.xlane.f32.xlu0 %v536_v39 }
 0x109   :  { %222 = vmax.xlane.f32.xlu1 %v189_v40  ;;  %220 = vmax.xlane.f32.xlu0 %v188_v41 }
 0x10d   :  { %226 = vmax.xlane.f32.xlu1 %v191_v42  ;;  %224 = vmax.xlane.f32.xlu0 %v190_v43 }
 0x111   :  { %230 = vmax.xlane.f32.xlu1 %v193_v44  ;;  %228 = vmax.xlane.f32.xlu0 %v192_v45 }
 0x115   :  { %234 = vmax.xlane.f32.xlu1 %v540_v46  ;;  %232 = vmax.xlane.f32.xlu0 %v542_v47 }
 0x182   :  { %v201_v48 = vpop.xlane.xlu1 %200  ;;  %v197_v49 = vpop.xlane.xlu0 %196 }
 0x183   :  { %vm212_vm2 = vcmp.ne.f32.partialorder %v197_v49, 0.0  ;;  %vm214_vm9 = vcmp.ne.f32.partialorder %v201_v48, 0.0 }
 0x184   :  { %vm244_vm8 = vmxor %vm212_vm2, %vm461_vm7 }
 0x185   :  { %vm552_vm0 = vmxor %vm214_vm9, %vm461_vm7 }
 0x186   :  { %v203_v50 = vpop.xlane.xlu1 %202  ;;  %v199_v51 = vpop.xlane.xlu0 %198 }
 0x187   :  { %vm213_vm4 = vcmp.ne.f32.partialorder %v199_v51, 0.0  ;;  %vm215_vm13 = vcmp.ne.f32.partialorder %v203_v50, 0.0 }
 0x188   :  { %vm245_vm10 = vmxor %vm213_vm4, %vm461_vm7 }
 0x189   :  { %vm247_vm2 = vmxor %vm215_vm13, %vm461_vm7 }
 0x18a   :  { %v207_v52 = vpop.xlane.xlu1 %206  ;;  %v205_v53 = vpop.xlane.xlu0 %204 }
 0x18b   :  { %vm217_vm3 = vcmp.ne.f32.partialorder %v207_v52, 0.0  ;;  %vm216_vm5 = vcmp.ne.f32.partialorder %v205_v53, 0.0 }
 0x18c   :  { %vm248_vm13 = vmxor %vm216_vm5, %vm461_vm7 }
 0x18e   :  { %v211_v54 = vpop.xlane.xlu1 %210  ;;  %v546_v55 = vpop.xlane.xlu0 %208 }
 0x192   :  { %v223_v58 = vpop.xlane.xlu1 %222  ;;  %v221_v59 = vpop.xlane.xlu0 %220 }
 0x193   :  { %vm237_vm11 = vcmp.ge.f32.partialorder %v223_v58, 0.5  ;;  %vm236_vm12 = vcmp.ge.f32.partialorder %v221_v59, 0.5 }
 0x194   :  { %vm253_vm14 = vmand %vm237_vm11, %vm245_vm10  ;;  %vm264_vm10 = vcmp.ge.f32.partialorder %v192_v45, 0.5  ;;  %vm267_vm11 = vcmp.ge.f32.partialorder %v540_v46, 0.5 }
 0x195   :  { %v301_v61 = vsel %vm253_vm14, %v348_v57, %v181_v35  ;;  %vm252_vm15 = vmand %vm236_vm12, %vm244_vm8  ;;  %v351_v9 = vsel %vm264_vm10, 1.0, %v460_v56  ;;  %vm219_vm14 = vcmp.ne.f32.partialorder %v211_v54, 0.0  ;;  %v354_v11 = vsel %vm267_vm11, 1.0, %v460_v56 }
 0x196   :  { %309 = vst [vmem:[#allocation7 + $0x8] sm:$0xff] %v301_v61  ;;  %v300_v1 = vsel %vm252_vm15, %v347_v60, %v521_v33  ;;  %v227_v2 = vpop.xlane.xlu1 %226  ;;  %v225_v3 = vpop.xlane.xlu0 %224  ;;  %vm249_vm12 = vmxor %vm217_vm3, %vm461_vm7 }
 0x197   :  { %308 = vst [vmem:[#allocation7] sm:$0xff] %v300_v1  ;;  %vm239_vm4 = vcmp.ge.f32.partialorder %v227_v2, 0.5  ;;  %vm238_vm8 = vcmp.ge.f32.partialorder %v225_v3, 0.5 }
 0x198   :  { %vm255_vm6 = vmand %vm239_vm4, %vm247_vm2  ;;  %vm266_vm4 = vcmp.ge.f32.partialorder %v542_v47, 0.5 }
 0x199   :  { %v303_v4 = vsel %vm255_vm6, %v350_v62, %v525_v34  ;;  %vm254_vm9 = vmand %vm238_vm8, %vm552_vm0  ;;  %vm218_vm0 = vcmp.ne.f32.partialorder %v546_v55, 0.0  ;;  %v353_v15 = vsel %vm266_vm4, 1.0, %v460_v56 }
 0x19a   :  { %311 = vst [vmem:[#allocation7 + $0x18] sm:$0xff] %v303_v4  ;;  %v302_v6 = vsel %vm254_vm9, %v349_v63, %v519_v32  ;;  %v231_v7 = vpop.xlane.xlu1 %230  ;;  %v229_v8 = vpop.xlane.xlu0 %228  ;;  %vm251_vm8 = vmxor %vm219_vm14, %vm461_vm7 }
 0x19b   :  { %310 = vst [vmem:[#allocation7 + $0x10] sm:$0xff] %v302_v6  ;;  %vm241_vm15 = vcmp.ge.f32.partialorder %v231_v7, 0.5  ;;  %vm240_vm2 = vcmp.ge.f32.partialorder %v229_v8, 0.5  ;;  %vm250_vm10 = vmxor %vm218_vm0, %vm461_vm7 }
 0x19c   :  { %vm257_vm1 = vmand %vm241_vm15, %vm249_vm12 }
 0x19d   :  { %v305_v10 = vsel %vm257_vm1, %v352_v5, %v528_v36  ;;  %vm256_vm3 = vmand %vm240_vm2, %vm248_vm13 }
 0x19e   :  { %313 = vst [vmem:[#allocation7 + $0x28] sm:$0xff] %v305_v10  ;;  %v304_v12 = vsel %vm256_vm3, %v351_v9, %v530_v37  ;;  %v235_v13 = vpop.xlane.xlu1 %234  ;;  %v233_v14 = vpop.xlane.xlu0 %232 }
 0x19f   :  { %312 = vst [vmem:[#allocation7 + $0x20] sm:$0xff] %v304_v12  ;;  %vm243_vm5 = vcmp.ge.f32.partialorder %v235_v13, 0.5  ;;  %vm242_vm6 = vcmp.ge.f32.partialorder %v233_v14, 0.5 }
 0x1a0   :  { %vm259_vm9 = vmand %vm243_vm5, %vm251_vm8 }
 0x1a1   :  { %v307_v16 = vsel %vm259_vm9, %v354_v11, %v534_v38  ;;  %vm258_vm12 = vmand %vm242_vm6, %vm250_vm10 }
 0x1a2   :  { %315 = vst [vmem:[#allocation7 + $0x38] sm:$0xff] %v307_v16  ;;  %v306_v17 = vsel %vm258_vm12, %v353_v15, %v536_v39 }
 0x1a3   :  { %314 = vst [vmem:[#allocation7 + $0x30] sm:$0xff] %v306_v17 }
 0x1a4   :  { %436 = shalt.err (!%p433_p11)
}
 0x1a5   :  { %327 = dma.vmem_to_hbm [thread:$0]  %s322_s1, 1024, %s584_s3, [#allocation6], %s458_s15, %s458_s15, %s459_s16  }
 0x1a6   :  { %451 = dma.done.wait [#allocation6], 1024  }
 0x1a7   :  { %452 = vsyncadd [#allocation6], 4294966272 }
 0x1a8   :  { %331 = vsyncpa [#allocation5], 1 }
 0x1a9   :  { %332 = vsyncpa [#allocation6], 1 }

// kernel: branch_1_fun.1
= control target key start
LH: loop header
LB: loop body
LE: loop exit
PB: predicated region body
PF: predicated region fallthrough
CT: control target
= control target key end

     0   :  { %11 = vsyncpa [#allocation4], 0  ;;  %s805_s0 = inlined_call_operand.<no memory space> [shape: f32[1], index: 0, kind: input, shape index: {}]   ;;  %s806_s1 = inlined_call_operand.hbm [shape: bf16[64,128], index: 1, kind: input, shape index: {}, may-alias: {1,2}]   ;;  %s807_s2 = inlined_call_operand.hbm [shape: bf16[64,128], index: 2, kind: input, shape index: {}, may-alias: {1,2}]   ;;  %s808_s3 = inlined_call_operand.vmem [shape: f32[1,64], index: 3, kind: output, shape index: {0}]   ;;  %s809_s4 = inlined_call_operand.vmem [shape: s32[1,64], index: 4, kind: output, shape index: {1}]  }
   0x1   :  { %12 = vsyncpa [#allocation6], 0  ;;  %s604_s15 = smov [#allocation3]  }
   0x2   :  { %s20_s16 = sshll.u32 %s604_s15, 4  ;;  %s21_s16 = int_to_ptr.vmem [resolvable:$true] %s20_s16 }
   0x3   :  { %s568_s17 = scalar_lea.vmem %s21_s16, 512  ;;  %p573_p1 = scmp.lt.s32.totalorder %s21_s16, %s21_s16 }
   0x4   :  { %p569_p0 = scmp.ne.s32.totalorder %s21_s16, %s568_s17  ;;  %p574_p2 = scmp.lt.s32.totalorder %s568_s17, %s568_s17 }
   0x6   :  { %p575_p3 = por %p574_p2, %p573_p1 }
   0x8   :  { %p576_p4 = pnand %p575_p3, %p569_p0 }
   0xa   :  { %579 = shalt.err (!%p576_p4)
}
   0xb   :  { %s605_s18 = smov 64   ;;  %s606_s19 = smov 4  }
   0xc   :  { %26 = dma.hbm_to_vmem [thread:$0]  %s806_s1, 512, %s21_s16, [#allocation4], %s605_s18, %s605_s18, %s606_s19  }
   0xd   :  { %s607_s22 = smov [#allocation5]  }
   0xe   :  { %s32_s23 = sshll.u32 %s607_s22, 4  ;;  %s33_s23 = int_to_ptr.vmem [resolvable:$true] %s32_s23 }
   0xf   :  { %s588_s24 = scalar_lea.vmem %s33_s23, 512  ;;  %p593_p6 = scmp.lt.s32.totalorder %s33_s23, %s33_s23 }
  0x10   :  { %p589_p5 = scmp.ne.s32.totalorder %s33_s23, %s588_s24  ;;  %p594_p7 = scmp.lt.s32.totalorder %s588_s24, %s588_s24 }
  0x12   :  { %p595_p8 = por %p594_p7, %p593_p6 }
  0x14   :  { %p596_p9 = pnand %p595_p8, %p589_p5 }
  0x16   :  { %599 = shalt.err (!%p596_p9)
}
  0x17   :  { %38 = dma.hbm_to_vmem [thread:$0]  %s807_s2, 512, %s33_s23, [#allocation6], %s605_s18, %s605_s18, %s606_s19  }
  0x18   :  { %600 = dma.done.wait [#allocation4], 512  }
  0x19   :  { %601 = vsyncadd [#allocation4], 4294966784 }
  0x1a   :  { %602 = dma.done.wait [#allocation6], 512  }
  0x1b   :  { %603 = vsyncadd [#allocation6], 4294966784  ;;  %v552_v0 = vld [vmem:[#allocation5 + $0x18] sm:$0xff]   ;;  %v553_v1 = vld [vmem:[#allocation5 + $0x10] sm:$0xff]   ;;  %v175_v8 = vlaneseq  ;;  %s515_s27 = sadd.f32 -0.1, %s805_s0  ;;  %v213_v14 = vstv %s805_s0 }
  0x1c   :  { %524 = vmatprep.subr.bf16.mxu0 %v552_v0  ;;  %540 = vmatprep.subr.bf16.mxu1 %v552_v0  ;;  %v556_v2 = vld [vmem:[#allocation3] sm:$0xff]   ;;  %v557_v3 = vld [vmem:[#allocation3 + $0x10] sm:$0xff]   ;;  %v554_v4 = vld [vmem:[#allocation5 + $0x8] sm:$0xff]   ;;  %vm232_vm2 = vcmask 523264  }
  0x1d   :  { %525 = vmatpush3.bf16.xpose.msra.mxu0 %v552_v0  ;;  %544 = vmatpush3.bf16.xpose.msra.mxu1 %v552_v0  ;;  %v555_v5 = vld [vmem:[#allocation5] sm:$0xff]   ;;  %v558_v6 = vld [vmem:[#allocation3 + $0x8] sm:$0xff]   ;;  %v559_v7 = vld [vmem:[#allocation3 + $0x18] sm:$0xff]   ;;  %v639_v9 = vshrl.u32 %v175_v8, 7  ;;  %v642_v11 = vand.u32 127, %v175_v8  ;;  %v223_v18 = vstv %s515_s27 }
  0x1e   :  { %526 = vmatprep.subr.bf16.mxu0 %v553_v1  ;;  %541 = vmatprep.subr.bf16.mxu1 %v553_v1 }
  0x1f   :  { %532 = vmatprep.mubr.bf16.mxu0 %v556_v2  ;;  %536 = vmatprep.mubr.bf16.mxu1 %v557_v3  ;;  %v178_v10 = vadd.s32 16, %v639_v9  ;;  %v180_v12 = vadd.s32 32, %v639_v9  ;;  %v179_v13 = vadd.s32 24, %v639_v9  ;;  %v183_v15 = vadd.s32 56, %v639_v9 }
  0x20   :  { %vm196_vm1 = vcmp.eq.s32.totalorder %v639_v9, %v642_v11  ;;  %v177_v19 = vadd.s32 8, %v639_v9  ;;  %v181_v20 = vadd.s32 40, %v639_v9  ;;  %v182_v22 = vadd.s32 48, %v639_v9 }
  0x21   :  { %vm198_vm0 = vcmp.eq.s32.totalorder %v178_v10, %v642_v11  ;;  %vm200_vm4 = vcmp.eq.s32.totalorder %v180_v12, %v642_v11  ;;  %vm199_vm5 = vcmp.eq.s32.totalorder %v179_v13, %v642_v11  ;;  %vm203_vm6 = vcmp.eq.s32.totalorder %v183_v15, %v642_v11 }
  0x22   :  { %vm197_vm8 = vcmp.eq.s32.totalorder %v177_v19, %v642_v11  ;;  %vm201_vm9 = vcmp.eq.s32.totalorder %v181_v20, %v642_v11  ;;  %vm202_vm10 = vcmp.eq.s32.totalorder %v182_v22, %v642_v11  ;;  %v276_v52 = vadd.s32 4294967280, %v642_v11 }
  0x23   :  { %v283_v53 = vadd.s32 4294967272, %v642_v11  ;;  %v269_v54 = vadd.s32 4294967288, %v642_v11  ;;  %v297_v55 = vadd.s32 4294967256, %v642_v11  ;;  %v290_v58 = vadd.s32 4294967264, %v642_v11 }
  0x24   :  { %v692_v56 = vsub.s32 %v276_v52, %v639_v9  ;;  %v697_v59 = vsub.s32 %v642_v11, %v639_v9  ;;  %v311_v61 = vadd.s32 4294967240, %v642_v11 }
  0x25   :  { %527 = vmatpush3.bf16.xpose.msra.mxu0 %v553_v1  ;;  %545 = vmatpush3.bf16.xpose.msra.mxu1 %v553_v1  ;;  %v700_v60 = vsub.s32 %v283_v53, %v639_v9  ;;  %v705_v0 = vsub.s32 %v269_v54, %v639_v9  ;;  %v304_v1 = vadd.s32 4294967248, %v642_v11  ;;  %v709_v2 = vsub.s32 %v297_v55, %v639_v9 }
  0x26   :  { %528 = vmatprep.subr.bf16.mxu0 %v554_v4  ;;  %542 = vmatprep.subr.bf16.mxu1 %v554_v4  ;;  %v720_v8 = vsub.s32 %v311_v61, %v639_v9 }
  0x2d   :  { %529 = vmatpush3.bf16.xpose.msra.mxu0 %v554_v4  ;;  %546 = vmatpush3.bf16.xpose.msra.mxu1 %v554_v4 }
  0x2e   :  { %530 = vmatprep.subr.bf16.mxu0 %v555_v5  ;;  %543 = vmatprep.subr.bf16.mxu1 %v555_v5 }
  0x35   :  { %531 = vmatpush3.bf16.xpose.msra.mxu0 %v555_v5  ;;  %547 = vmatpush3.bf16.xpose.msra.mxu1 %v555_v5 }
  0x3c   :  { %533 = vmatmul.mubr.bf16.vlgmr.msra.gmra.mxu0 %v558_v6  ;;  %537 = vmatmul.mubr.bf16.vlgmr.msra.gmra.mxu1 %v559_v7  ;;  %v717_v7 = vsub.s32 %v290_v58, %v639_v9 }
  0xfc   :  { %v534_v16 = vpop.f32.mrf.mxu0  ;;  %v538_v17 = vpop.f32.mrf.mxu1 }
  0xfd   :  { %v206_v21 = vsel %vm198_vm0, 0.0, %v534_v16  ;;  %v210_v41 = vsel %vm202_vm10, 0.0, %v538_v17  ;;  %v730_v16 = vsub.s32 %v304_v1, %v639_v9 }
  0xfe   :  { %vm216_vm3 = vcmp.lt.f32.partialorder %v206_v21, %v213_v14  ;;  %v144_v23 = vpop.f32.mrf.mxu0  ;;  %v160_v24 = vpop.f32.mrf.mxu1  ;;  %vm220_vm0 = vcmp.lt.f32.partialorder %v210_v41, %v213_v14 }
  0xff   :  { %v204_v25 = vsel %vm196_vm1, 0.0, %v144_v23  ;;  %v226_v26 = vsel %vm216_vm3, %v206_v21, %v223_v18  ;;  %v208_v30 = vsel %vm200_vm4, 0.0, %v160_v24  ;;  %v681_v49 = vsel %vm220_vm0, %v210_v41, %v223_v18 }
 0x100   :  { %vm214_vm7 = vcmp.lt.f32.partialorder %v204_v25, %v213_v14  ;;  %v535_v27 = vpop.f32.mrf.mxu0  ;;  %v539_v28 = vpop.f32.mrf.mxu1  ;;  %v239_v29 = vsel %vm232_vm2, %v226_v26, -inf  ;;  %vm218_vm12 = vcmp.lt.f32.partialorder %v208_v30, %v213_v14  ;;  %v251_v51 = vsel %vm232_vm2, %v681_v49, -inf }
 0x101   :  { %v207_v31 = vsel %vm199_vm5, 0.0, %v535_v27  ;;  %240 = vmax.xlane.f32.xlu1 %v239_v29  ;;  %v224_v32 = vsel %vm214_vm7, %v204_v25, %v223_v18  ;;  %v211_v36 = vsel %vm203_vm6, 0.0, %v539_v28  ;;  %v673_v45 = vsel %vm218_vm12, %v208_v30, %v223_v18 }
 0x102   :  { %vm217_vm11 = vcmp.lt.f32.partialorder %v207_v31, %v213_v14  ;;  %v147_v33 = vpop.f32.mrf.mxu0  ;;  %v163_v34 = vpop.f32.mrf.mxu1  ;;  %v233_v35 = vsel %vm232_vm2, %v224_v32, -inf  ;;  %vm221_vm15 = vcmp.lt.f32.partialorder %v211_v36, %v213_v14  ;;  %v245_v48 = vsel %vm232_vm2, %v673_v45, -inf }
 0x103   :  { %v205_v37 = vsel %vm197_vm8, 0.0, %v147_v33  ;;  %v209_v38 = vsel %vm201_vm9, 0.0, %v163_v34  ;;  %234 = vmax.xlane.f32.xlu0 %v233_v35  ;;  %v227_v39 = vsel %vm217_vm11, %v207_v31, %v223_v18  ;;  %v677_v47 = vsel %vm221_vm15, %v211_v36, %v223_v18 }
 0x104   :  { %vm215_vm13 = vcmp.lt.f32.partialorder %v205_v37, %v213_v14  ;;  %vm219_vm14 = vcmp.lt.f32.partialorder %v209_v38, %v213_v14  ;;  %v242_v40 = vsel %vm232_vm2, %v227_v39, -inf  ;;  %v254_v50 = vsel %vm232_vm2, %v677_v47, -inf }
 0x105   :  { %243 = vmax.xlane.f32.xlu1 %v242_v40  ;;  %v225_v42 = vsel %vm215_vm13, %v205_v37, %v223_v18  ;;  %v670_v43 = vsel %vm219_vm14, %v209_v38, %v223_v18  ;;  %vm274_vm3 = vcmask 130112   ;;  %vm281_vm5 = vcmask 195712  }
 0x106   :  { %v236_v44 = vsel %vm232_vm2, %v225_v42, -inf  ;;  %v248_v46 = vsel %vm232_vm2, %v670_v43, -inf  ;;  %vm288_vm6 = vcmask 261312   ;;  %vm295_vm8 = vcmask 326912  }
 0x107   :  { %237 = vmax.xlane.f32.xlu0 %v236_v44  ;;  %vm302_vm12 = vcmask 392512   ;;  %vm309_vm13 = vcmask 458112   ;;  %vm316_vm14 = vcmask 523712   ;;  %vm319_vm0 = vcmask 516096  }
 0x109   :  { %249 = vmax.xlane.f32.xlu1 %v248_v46 }
 0x10b   :  { %246 = vmax.xlane.f32.xlu0 %v245_v48 }
 0x10d   :  { %255 = vmax.xlane.f32.xlu1 %v254_v50 }
 0x10f   :  { %252 = vmax.xlane.f32.xlu0 %v251_v51 }
 0x18a   :  { %v241_v57 = vpop.xlane.xlu1 %240 }
 0x18b   :  { %vm323_vm1 = vcmp.eq.f32.partialorder %v226_v26, %v241_v57  ;;  %v280_v20 = vrot.slane %v241_v57, %v692_v56 }
 0x18c   :  { %v331_v62 = vsel %vm323_vm1, %v642_v11, 64  ;;  %v235_v63 = vpop.xlane.xlu0 %234 }
 0x18d   :  { %vm321_vm4 = vcmp.eq.f32.partialorder %v224_v32, %v235_v63  ;;  %v712_v3 = vsel %vm232_vm2, %v331_v62, 2147483647  ;;  %v268_v17 = vrot.slane %v235_v63, %v697_v59 }
 0x18e   :  { %v329_v4 = vsel %vm321_vm4, %v642_v11, 64  ;;  %v244_v5 = vpop.xlane.xlu1 %243  ;;  %v369_v6 = vshra.s32 %v712_v3, 16  ;;  %v368_v61 = vand.u32 65535, %v712_v3 }
 0x18f   :  { %vm324_vm7 = vcmp.eq.f32.partialorder %v227_v39, %v244_v5  ;;  %v723_v10 = vsel %vm232_vm2, %v329_v4, 2147483647  ;;  %v287_v21 = vrot.slane %v244_v5, %v700_v60 }
 0x190   :  { %v332_v12 = vsel %vm324_vm7, %v642_v11, 64  ;;  %v238_v13 = vpop.xlane.xlu0 %237  ;;  %v726_v14 = vcvt.s32.f32 %v369_v6  ;;  %v339_v15 = vshra.s32 %v723_v10, 16  ;;  %v370_v63 = vcvt.s32.f32 %v368_v61 }
 0x191   :  { %v273_v18 = vrot.slane %v238_v13, %v705_v0  ;;  %vm322_vm9 = vcmp.eq.f32.partialorder %v225_v42, %v238_v13  ;;  %v735_v19 = vsel %vm232_vm2, %v332_v12, 2147483647  ;;  %v338_v4 = vand.u32 65535, %v723_v10 }
 0x192   :  { %v330_v22 = vsel %vm322_vm9, %v642_v11, 64  ;;  %v250_v23 = vpop.xlane.xlu1 %249  ;;  %372 = vmin.xlane.f32.xlu0 %v726_v14  ;;  %v384_v9 = vshra.s32 %v735_v19, 16  ;;  %v744_v25 = vcvt.s32.f32 %v339_v15  ;;  %v383_v1 = vand.u32 65535, %v735_v19 }
 0x193   :  { %v275_v24 = vsel %vm274_vm3, %v273_v18, %v268_v17  ;;  %vm326_vm10 = vcmp.eq.f32.partialorder %v670_v43, %v250_v23  ;;  %v747_v26 = vsel %vm232_vm2, %v330_v22, 2147483647  ;;  %v301_v37 = vrot.slane %v250_v23, %v709_v2 }
 0x194   :  { %v282_v27 = vsel %vm281_vm5, %v280_v20, %v275_v24  ;;  %v334_v28 = vsel %vm326_vm10, %v642_v11, 64  ;;  %v247_v29 = vpop.xlane.xlu0 %246  ;;  %v386_v30 = vcvt.s32.f32 %v384_v9  ;;  %v354_v31 = vshra.s32 %v747_v26, 16 }
 0x195   :  { %v289_v32 = vsel %vm288_vm6, %v287_v21, %v282_v27  ;;  %v294_v33 = vrot.slane %v247_v29, %v717_v7  ;;  %vm325_vm11 = vcmp.eq.f32.partialorder %v673_v45, %v247_v29  ;;  %v756_v34 = vsel %vm232_vm2, %v334_v28, 2147483647 }
 0x196   :  { %v333_v35 = vsel %vm325_vm11, %v642_v11, 64  ;;  %387 = vmin.xlane.f32.xlu1 %v386_v30  ;;  %v256_v36 = vpop.xlane.xlu1 %255  ;;  %342 = vmin.xlane.f32.xlu0 %v744_v25  ;;  %v356_v42 = vcvt.s32.f32 %v354_v31  ;;  %v414_v44 = vshra.s32 %v756_v34, 16  ;;  %v385_v13 = vcvt.s32.f32 %v383_v1 }
 0x197   :  { %v296_v38 = vsel %vm295_vm8, %v294_v33, %v289_v32  ;;  %vm328_vm15 = vcmp.eq.f32.partialorder %v677_v47, %v256_v36  ;;  %v397_v39 = vsel %vm232_vm2, %v333_v35, 2147483647  ;;  %v315_v48 = vrot.slane %v256_v36, %v720_v8 }
 0x198   :  { %v336_v40 = vsel %vm328_vm15, %v642_v11, 64  ;;  %v253_v41 = vpop.xlane.xlu0 %252  ;;  %v399_v43 = vshra.s32 %v397_v39, 16  ;;  %v303_v47 = vsel %vm302_vm12, %v301_v37, %v296_v38  ;;  %v416_v55 = vcvt.s32.f32 %v414_v44 }
 0x199   :  { %v308_v45 = vrot.slane %v253_v41, %v730_v16  ;;  %vm327_vm1 = vcmp.eq.f32.partialorder %v681_v49, %v253_v41  ;;  %v442_v46 = vsel %vm232_vm2, %v336_v40, 2147483647  ;;  %v340_v15 = vcvt.s32.f32 %v338_v4 }
 0x19a   :  { %v335_v50 = vsel %vm327_vm1, %v642_v11, 64  ;;  %357 = vmin.xlane.f32.xlu1 %v356_v42  ;;  %v401_v51 = vcvt.s32.f32 %v399_v43  ;;  %v444_v49 = vshra.s32 %v442_v46, 16  ;;  %v353_v17 = vand.u32 65535, %v747_v26 }
 0x19b   :  { %v310_v52 = vsel %vm309_vm13, %v308_v45, %v303_v47  ;;  %v427_v53 = vsel %vm232_vm2, %v335_v50, 2147483647  ;;  %v398_v20 = vand.u32 65535, %v397_v39 }
 0x19c   :  { %v317_v54 = vsel %vm316_vm14, %v315_v48, %v310_v52  ;;  %402 = vmin.xlane.f32.xlu0 %v401_v51  ;;  %v429_v57 = vshra.s32 %v427_v53, 16  ;;  %v446_v11 = vcvt.s32.f32 %v444_v49  ;;  %v355_v10 = vcvt.s32.f32 %v353_v17 }
 0x19d   :  { %320 = vst.msk [vmem:[%s808_s3] sm:$0x1] %vm319_vm0, %v317_v54  ;;  %v400_v23 = vcvt.s32.f32 %v398_v20  ;;  %v428_v9 = vand.u32 65535, %v427_v53 }
 0x19e   :  { %417 = vmin.xlane.f32.xlu1 %v416_v55  ;;  %v431_v58 = vcvt.s32.f32 %v429_v57 }
 0x1a0   :  { %432 = vmin.xlane.f32.xlu0 %v431_v58 }
 0x1a2   :  { %447 = vmin.xlane.f32.xlu1 %v446_v11 }
 0x21b   :  { %v373_v62 = vpop.xlane.xlu0 %372 }
 0x21c   :  { %vm374_vm2 = vcmp.eq.f32.partialorder %v726_v14, %v373_v62  ;;  %v413_v14 = vand.u32 65535, %v756_v34  ;;  %v379_v37 = vcvt.f32.s32 %v373_v62 }
 0x21d   :  { %v375_v5 = vsel %vm374_vm2, %v370_v63, inf }
 0x21e   :  { %376 = vmin.xlane.f32.xlu0 %v375_v5  ;;  %v415_v27 = vcvt.s32.f32 %v413_v14  ;;  %v380_v48 = vshll.u32 %v379_v37, 16 }
 0x21f   :  { %v388_v6 = vpop.xlane.xlu1 %387  ;;  %v343_v12 = vpop.xlane.xlu0 %342 }
 0x220   :  { %vm389_vm4 = vcmp.eq.f32.partialorder %v386_v30, %v388_v6  ;;  %vm344_vm7 = vcmp.eq.f32.partialorder %v744_v25, %v343_v12  ;;  %v443_v25 = vand.u32 65535, %v442_v46  ;;  %v430_v30 = vcvt.s32.f32 %v428_v9 }
 0x221   :  { %v390_v3 = vsel %vm389_vm4, %v385_v13, inf  ;;  %v345_v18 = vsel %vm344_vm7, %v340_v15, inf  ;;  %v349_v36 = vcvt.f32.s32 %v343_v12  ;;  %v394_v38 = vcvt.f32.s32 %v388_v6 }
 0x222   :  { %391 = vmin.xlane.f32.xlu1 %v390_v3  ;;  %346 = vmin.xlane.f32.xlu0 %v345_v18  ;;  %v445_v33 = vcvt.s32.f32 %v443_v25 }
 0x223   :  { %v358_v19 = vpop.xlane.xlu1 %357  ;;  %v350_v45 = vshll.u32 %v349_v36, 16  ;;  %v395_v47 = vshll.u32 %v394_v38, 16 }
 0x224   :  { %vm359_vm9 = vcmp.eq.f32.partialorder %v356_v42, %v358_v19  ;;  %v364_v41 = vcvt.f32.s32 %v358_v19 }
 0x225   :  { %v403_v21 = vpop.xlane.xlu0 %402  ;;  %v360_v22 = vsel %vm359_vm9, %v355_v10, inf }
 0x226   :  { %361 = vmin.xlane.f32.xlu1 %v360_v22  ;;  %vm404_vm10 = vcmp.eq.f32.partialorder %v401_v51, %v403_v21  ;;  %v409_v46 = vcvt.f32.s32 %v403_v21  ;;  %v365_v52 = vshll.u32 %v364_v41, 16 }
 0x227   :  { %v418_v24 = vpop.xlane.xlu1 %417  ;;  %v405_v26 = vsel %vm404_vm10, %v400_v23, inf }
 0x228   :  { %406 = vmin.xlane.f32.xlu0 %v405_v26  ;;  %vm419_vm11 = vcmp.eq.f32.partialorder %v416_v55, %v418_v24  ;;  %v424_v50 = vcvt.f32.s32 %v418_v24 }
 0x229   :  { %v433_v28 = vpop.xlane.xlu0 %432  ;;  %v420_v29 = vsel %vm419_vm11, %v415_v27, inf }
 0x22a   :  { %421 = vmin.xlane.f32.xlu1 %v420_v29  ;;  %vm434_vm15 = vcmp.eq.f32.partialorder %v431_v58, %v433_v28  ;;  %v439_v55 = vcvt.f32.s32 %v433_v28  ;;  %v425_v63 = vshll.u32 %v424_v50, 16 }
 0x22b   :  { %v448_v31 = vpop.xlane.xlu1 %447  ;;  %v435_v32 = vsel %vm434_vm15, %v430_v30, inf }
 0x22c   :  { %436 = vmin.xlane.f32.xlu0 %v435_v32  ;;  %vm449_vm1 = vcmp.eq.f32.partialorder %v446_v11, %v448_v31  ;;  %v410_v11 = vshll.u32 %v409_v46, 16  ;;  %v454_v1 = vcvt.f32.s32 %v448_v31  ;;  %v440_v15 = vshll.u32 %v439_v55, 16 }
 0x22d   :  { %v450_v34 = vsel %vm449_vm1, %v445_v33, inf }
 0x22e   :  { %451 = vmin.xlane.f32.xlu1 %v450_v34  ;;  %v455_v21 = vshll.u32 %v454_v1, 16 }
 0x2a7   :  { %v377_v35 = vpop.xlane.xlu0 %376 }
 0x2a8   :  { %v378_v43 = vcvt.f32.s32 %v377_v35 }
 0x2aa   :  { %v381_v57 = vadd.s32 %v380_v48, %v378_v43 }
 0x2ab   :  { %v392_v39 = vpop.xlane.xlu1 %391  ;;  %v347_v40 = vpop.xlane.xlu0 %346 }
 0x2ac   :  { %v348_v42 = vcvt.f32.s32 %v347_v40  ;;  %v393_v44 = vcvt.f32.s32 %v392_v39  ;;  %v469_v17 = vrot.slane %v381_v57, %v692_v56 }
 0x2ae   :  { %v351_v53 = vadd.s32 %v350_v45, %v348_v42  ;;  %v396_v49 = vadd.s32 %v395_v47, %v393_v44 }
 0x2af   :  { %v362_v51 = vpop.xlane.xlu1 %361 }
 0x2b0   :  { %v363_v54 = vcvt.f32.s32 %v362_v51  ;;  %v460_v5 = vrot.slane %v351_v53, %v697_v59  ;;  %v474_v3 = vrot.slane %v396_v49, %v700_v60 }
 0x2b1   :  { %v407_v58 = vpop.xlane.xlu0 %406 }
 0x2b2   :  { %v366_v61 = vadd.s32 %v365_v52, %v363_v54  ;;  %v408_v62 = vcvt.f32.s32 %v407_v58 }
 0x2b3   :  { %v422_v4 = vpop.xlane.xlu1 %421 }
 0x2b4   :  { %v464_v6 = vrot.slane %v366_v61, %v705_v0  ;;  %v411_v12 = vadd.s32 %v410_v11, %v408_v62  ;;  %v423_v13 = vcvt.f32.s32 %v422_v4 }
 0x2b5   :  { %v437_v18 = vpop.xlane.xlu0 %436 }
 0x2b6   :  { %v465_v20 = vsel %vm274_vm3, %v464_v6, %v460_v5  ;;  %v479_v19 = vrot.slane %v411_v12, %v717_v7  ;;  %v426_v10 = vadd.s32 %v425_v63, %v423_v13  ;;  %v438_v14 = vcvt.f32.s32 %v437_v18 }
 0x2b7   :  { %v470_v22 = vsel %vm281_vm5, %v469_v17, %v465_v20  ;;  %v452_v59 = vpop.xlane.xlu1 %451 }
 0x2b8   :  { %v475_v0 = vsel %vm288_vm6, %v474_v3, %v470_v22  ;;  %v484_v23 = vrot.slane %v426_v10, %v709_v2  ;;  %v441_v9 = vadd.s32 %v440_v15, %v438_v14  ;;  %v453_v24 = vcvt.f32.s32 %v452_v59 }
 0x2b9   :  { %v480_v56 = vsel %vm295_vm8, %v479_v19, %v475_v0 }
 0x2ba   :  { %v485_v60 = vsel %vm302_vm12, %v484_v23, %v480_v56  ;;  %v489_v26 = vrot.slane %v441_v9, %v730_v16  ;;  %v456_v27 = vadd.s32 %v455_v21, %v453_v24 }
 0x2bc   :  { %v490_v7 = vsel %vm309_vm13, %v489_v26, %v485_v60  ;;  %v494_v25 = vrot.slane %v456_v27, %v720_v8 }
 0x2be   :  { %v495_v28 = vsel %vm316_vm14, %v494_v25, %v490_v7 }
 0x2bf   :  { %496 = vst.msk [vmem:[%s809_s4] sm:$0x1] %vm319_vm0, %v495_v28 }
 0x2c0   :  { %505 = vsyncpa [#allocation4], 1 }
 0x2c1   :  { %506 = vsyncpa [#allocation6], 1 }

</bundles_post_ra>
